<compile_context>
chip_gen: v7x
topology: tpu7x:2x2x1
jax: 0.10.0
libtpu: 0.0.40
codegen_flags: <defaults>
</compile_context>

<pallas_src>
import functools
import math

import jax
import jax.numpy as jnp
from jax import lax
from jax.experimental import pallas as pl
from jax.experimental.pallas import tpu as pltpu  # noqa: F401  (TPU backend module)


# ----------------------------- fused Pallas kernel -----------------------------

def _fused_dagnn_kernel(a_ref, x_ref, w1_ref, b1_ref, w2_ref, b2_ref, s_ref,
                        o_ref, *, k):
    # Shapes (Fp/Hp/Dp are lane-padded to 128; Np is sublane-padded to 8):
    #   a: [Np, Np]   x: [Np, Fp]   w1: [Fp, Hp]  b1: [1, Hp]
    #   w2: [Hp, Dp]  b2: [1, Dp]   s:  [1, Dp]   o: [Np, Dp]

    # ---- MLPLayer 1 (dropout p=0 -> identity, activation=relu) ----
    h = jnp.dot(x_ref[...], w1_ref[...], preferred_element_type=jnp.float32)
    h = jnp.maximum(h + b1_ref[...], 0.0)
    # ---- MLPLayer 2 (dropout p=0 -> identity, no activation) ----
    h = jnp.dot(h, w2_ref[...], preferred_element_type=jnp.float32) + b2_ref[...]

    # ---- DAGNNConv ----
    a = a_ref[...]
    # in-degree norm (row sums of A[dst, src]); guard deg==0 (only padded rows,
    # real inputs carry self-loops) so padding never injects inf/nan.
    deg = jnp.sum(a, axis=1, keepdims=True)                       # [Np, 1]
    norm = jnp.where(deg > 0.0, lax.rsqrt(deg), 0.0)              # [Np, 1]

    s_row = s_ref[...]                                            # [1, Dp]

    def gated(hk):
        # per-node, per-hop gate: sigmoid(<h_k, s>) — VPU mul + XLU lane-reduce
        score = jax.nn.sigmoid(jnp.sum(hk * s_row, axis=-1, keepdims=True))
        return score * hk

    acc = gated(h)                                                # hop 0
    for _ in range(k):                                            # k small: static unroll
        h = norm * jnp.dot(a, norm * h, preferred_element_type=jnp.float32)
        acc = acc + gated(h)

    o_ref[...] = acc.astype(o_ref.dtype)


# ----------------------------- pallas_call wrapper -----------------------------

def _full_spec(shape):
    nd = len(shape)
    return pl.BlockSpec(shape, lambda: (0,) * nd)


def _round_up(x, m):
    return ((x + m - 1) // m) * m


def dagnn_forward(params, adj, feats):
    n, in_dim = feats.shape
    fp = params["w1"].shape[0]
    dp = params["w2"].shape[1]
    out_dim = params["out_dim"]
    np_ = _round_up(n, 8)  # sublane-align the node dim

    # one-time pads in the wrapper (tiny XLA pads); padded rows/cols are zeros
    x = jnp.pad(feats.astype(jnp.float32), ((0, np_ - n), (0, fp - in_dim)))
    a = jnp.pad(adj.astype(jnp.float32), ((0, np_ - n), (0, np_ - n)))

    out = pl.pallas_call(
        functools.partial(_fused_dagnn_kernel, k=params["k"]),
        out_shape=jax.ShapeDtypeStruct((np_, dp), jnp.float32),
        in_specs=[
            _full_spec((np_, np_)),
            _full_spec((np_, fp)),
            _full_spec(params["w1"].shape),
            _full_spec(params["b1"].shape),
            _full_spec(params["w2"].shape),
            _full_spec(params["b2"].shape),
            _full_spec(params["s"].shape),
        ],
        out_specs=_full_spec((np_, dp)),
    )(a, x, params["w1"], params["b1"], params["w2"], params["b2"], params["s"])

    return out[:n, :out_dim]


# ----------------------------- parameter init -----------------------------

def xavier_uniform(key, shape, gain):
    # matches torch.nn.init.xavier_uniform_ for 2-D tensors:
    # torch Linear weight is [out, in] -> fan_in = shape[1], fan_out = shape[0]
    fan_out, fan_in = shape[0], shape[1]
    bound = gain * math.sqrt(6.0 / (fan_in + fan_out))
    return jax.random.uniform(key, shape, minval=-bound, maxval=bound,
                              dtype=jnp.float32)


def init_dagnn_params(key, k, in_dim, hid_dim, out_dim):
    k1, k2, k3 = jax.random.split(key, 3)
    relu_gain = math.sqrt(2.0)          # calculate_gain('relu')
    sigmoid_gain = 1.0                  # calculate_gain('sigmoid')

    # torch Linear weight is [out, in]; MXU-friendly layout is [in, out]
    w1 = xavier_uniform(k1, (hid_dim, in_dim), relu_gain).T      # [in,  hid]
    w2 = xavier_uniform(k2, (out_dim, hid_dim), 1.0).T           # [hid, out]
    s = xavier_uniform(k3, (out_dim, 1), sigmoid_gain).T         # [1,   out]

    fp, hp, dp = (_round_up(in_dim, 128), _round_up(hid_dim, 128),
                  _round_up(out_dim, 128))

    def pad2(m, r, c):
        return jnp.pad(m, ((0, r - m.shape[0]), (0, c - m.shape[1])))

    return {
        "w1": pad2(w1, fp, hp),
        "b1": jnp.zeros((1, hp), jnp.float32),
        "w2": pad2(w2, hp, dp),
        "b2": jnp.zeros((1, dp), jnp.float32),
        "s": pad2(s, 1, dp),
        "k": k,
        "out_dim": out_dim,
    }


# ----------------------------- pure-JAX reference -----------------------------

def dagnn_reference(params, adj, feats, in_dim, hid_dim, out_dim):
    w1 = params["w1"][:in_dim, :hid_dim]
    b1 = params["b1"][0, :hid_dim]
    w2 = params["w2"][:hid_dim, :out_dim]
    b2 = params["b2"][0, :out_dim]
    s = params["s"][0, :out_dim]

    h = jnp.maximum(feats @ w1 + b1, 0.0)
    h = h @ w2 + b2

    deg = adj.sum(axis=1, keepdims=True)
    norm = jnp.where(deg > 0.0, 1.0 / jnp.sqrt(deg), 0.0)

    acc = jax.nn.sigmoid(h @ s)[:, None] * h
    for _ in range(params["k"]):
        h = norm * (adj @ (norm * h))
        acc = acc + jax.nn.sigmoid(h @ s)[:, None] * h
    return acc


# ----------------------------- main -----------------------------

if __name__ == "__main__":
    key = jax.random.PRNGKey(0)
    k_hops, in_dim, hid_dim, out_dim = 4, 16, 32, 8
    num_nodes = 32

    k_feat, k_adj, k_params = jax.random.split(key, 3)

    # deterministic node features
    feats = jax.random.normal(k_feat, (num_nodes, in_dim), dtype=jnp.float32)

    # deterministic sparse-ish directed graph with self-loops (avoids 0 in-degree)
    rand = jax.random.uniform(k_adj, (num_nodes, num_nodes))
    adj = (rand < 0.2).astype(jnp.float32)
    adj = jnp.maximum(adj, jnp.eye(num_nodes, dtype=jnp.float32))  # A[dst, src]

    params = init_dagnn_params(k_params, k_hops, in_dim, hid_dim, out_dim)

    out = dagnn_forward(params, adj, feats)
    jax.block_until_ready(out)

    assert out.shape == (num_nodes, out_dim)
    assert bool(jnp.all(jnp.isfinite(out)))

    ref = dagnn_reference(params, adj, feats, in_dim, hid_dim, out_dim)
    assert bool(jnp.allclose(out, ref, rtol=1e-3, atol=1e-3))

    print("KERNEL_OK")
</pallas_src>

<mosaic_0001>
module attributes {stable_mosaic.version = 11 : i64} {
  func.func @_fused_dagnn_kernel(%arg0: memref<32x32xf32, #tpu.memory_space<vmem>>, %arg1: memref<32x128xf32, #tpu.memory_space<vmem>>, %arg2: memref<128x128xf32, #tpu.memory_space<vmem>>, %arg3: memref<1x128xf32, #tpu.memory_space<vmem>>, %arg4: memref<128x128xf32, #tpu.memory_space<vmem>>, %arg5: memref<1x128xf32, #tpu.memory_space<vmem>>, %arg6: memref<1x128xf32, #tpu.memory_space<vmem>>, %arg7: memref<32x128xf32, #tpu.memory_space<vmem>>) attributes {dimension_semantics = [], scalar_prefetch = 0 : i64, scratch_operands = 0 : i64, tpu.core_type = #tpu.core_type<tc>} {
    %c0 = arith.constant 0 : index
    %c0_0 = arith.constant 0 : index
    %0 = vector.load %arg1[%c0, %c0_0] : memref<32x128xf32, #tpu.memory_space<vmem>>, vector<32x128xf32>
    %c0_1 = arith.constant 0 : index
    %c0_2 = arith.constant 0 : index
    %1 = vector.load %arg2[%c0_1, %c0_2] : memref<128x128xf32, #tpu.memory_space<vmem>>, vector<128x128xf32>
    %cst = arith.constant dense<0.000000e+00> : vector<32x128xf32>
    %2 = tpu.matmul %0, %1, %cst {dimension_numbers = #tpu.dot_dimension_numbers<[1], [0], [0], [1], [0, 0, 1, 1], [], []>} : vector<32x128xf32>, vector<128x128xf32>, vector<32x128xf32> -> vector<32x128xf32>
    %c0_3 = arith.constant 0 : index
    %c0_4 = arith.constant 0 : index
    %3 = vector.load %arg3[%c0_3, %c0_4] : memref<1x128xf32, #tpu.memory_space<vmem>>, vector<1x128xf32>
    %4 = vector.broadcast %3 : vector<1x128xf32> to vector<32x128xf32>
    %5 = arith.addf %2, %4 : vector<32x128xf32>
    %cst_5 = arith.constant 0.000000e+00 : f32
    %6 = vector.broadcast %cst_5 : f32 to vector<32x128xf32>
    %7 = arith.maximumf %5, %6 : vector<32x128xf32>
    %c0_6 = arith.constant 0 : index
    %c0_7 = arith.constant 0 : index
    %8 = vector.load %arg4[%c0_6, %c0_7] : memref<128x128xf32, #tpu.memory_space<vmem>>, vector<128x128xf32>
    %cst_8 = arith.constant dense<0.000000e+00> : vector<32x128xf32>
    %9 = tpu.matmul %7, %8, %cst_8 {dimension_numbers = #tpu.dot_dimension_numbers<[1], [0], [0], [1], [0, 0, 1, 1], [], []>} : vector<32x128xf32>, vector<128x128xf32>, vector<32x128xf32> -> vector<32x128xf32>
    %c0_9 = arith.constant 0 : index
    %c0_10 = arith.constant 0 : index
    %10 = vector.load %arg5[%c0_9, %c0_10] : memref<1x128xf32, #tpu.memory_space<vmem>>, vector<1x128xf32>
    %11 = vector.broadcast %10 : vector<1x128xf32> to vector<32x128xf32>
    %12 = arith.addf %9, %11 : vector<32x128xf32>
    %c0_11 = arith.constant 0 : index
    %c0_12 = arith.constant 0 : index
    %13 = vector.load %arg0[%c0_11, %c0_12] : memref<32x32xf32, #tpu.memory_space<vmem>>, vector<32x32xf32>
    %cst_13 = arith.constant dense<0.000000e+00> : vector<32xf32>
    %14 = vector.multi_reduction <add>, %13, %cst_13 [1] : vector<32x32xf32> to vector<32xf32>
    %15 = vector.shape_cast %14 : vector<32xf32> to vector<32x1xf32>
    %cst_14 = arith.constant 0.000000e+00 : f32
    %16 = vector.broadcast %cst_14 : f32 to vector<32x1xf32>
    %17 = arith.cmpf ogt, %15, %16 : vector<32x1xf32>
    %18 = math.rsqrt %15 : vector<32x1xf32>
    %cst_15 = arith.constant 0.000000e+00 : f32
    %19 = vector.broadcast %cst_15 : f32 to vector<32x1xf32>
    %20 = arith.select %17, %18, %19 : vector<32x1xi1>, vector<32x1xf32>
    %c0_16 = arith.constant 0 : index
    %c0_17 = arith.constant 0 : index
    %21 = vector.load %arg6[%c0_16, %c0_17] : memref<1x128xf32, #tpu.memory_space<vmem>>, vector<1x128xf32>
    %22 = vector.broadcast %21 : vector<1x128xf32> to vector<32x128xf32>
    %23 = arith.mulf %12, %22 : vector<32x128xf32>
    %cst_18 = arith.constant dense<0.000000e+00> : vector<32xf32>
    %24 = vector.multi_reduction <add>, %23, %cst_18 [1] : vector<32x128xf32> to vector<32xf32>
    %25 = vector.shape_cast %24 : vector<32xf32> to vector<32x1xf32>
    %26 = arith.negf %25 : vector<32x1xf32>
    %27 = math.exp %26 : vector<32x1xf32>
    %cst_19 = arith.constant 1.000000e+00 : f32
    %28 = vector.broadcast %cst_19 : f32 to vector<32x1xf32>
    %29 = arith.addf %28, %27 : vector<32x1xf32>
    %30 = arith.divf %28, %29 : vector<32x1xf32>
    %31 = vector.broadcast %30 : vector<32x1xf32> to vector<32x128xf32>
    %32 = arith.mulf %31, %12 : vector<32x128xf32>
    %33 = vector.broadcast %20 : vector<32x1xf32> to vector<32x128xf32>
    %34 = arith.mulf %33, %12 : vector<32x128xf32>
    %cst_20 = arith.constant dense<0.000000e+00> : vector<32x128xf32>
    %35 = tpu.matmul %13, %34, %cst_20 {dimension_numbers = #tpu.dot_dimension_numbers<[1], [0], [0], [1], [0, 0, 1, 1], [], []>} : vector<32x32xf32>, vector<32x128xf32>, vector<32x128xf32> -> vector<32x128xf32>
    %36 = vector.broadcast %20 : vector<32x1xf32> to vector<32x128xf32>
    %37 = arith.mulf %36, %35 : vector<32x128xf32>
    %38 = vector.broadcast %21 : vector<1x128xf32> to vector<32x128xf32>
    %39 = arith.mulf %37, %38 : vector<32x128xf32>
    %cst_21 = arith.constant dense<0.000000e+00> : vector<32xf32>
    %40 = vector.multi_reduction <add>, %39, %cst_21 [1] : vector<32x128xf32> to vector<32xf32>
    %41 = vector.shape_cast %40 : vector<32xf32> to vector<32x1xf32>
    %42 = arith.negf %41 : vector<32x1xf32>
    %43 = math.exp %42 : vector<32x1xf32>
    %cst_22 = arith.constant 1.000000e+00 : f32
    %44 = vector.broadcast %cst_22 : f32 to vector<32x1xf32>
    %45 = arith.addf %44, %43 : vector<32x1xf32>
    %46 = arith.divf %44, %45 : vector<32x1xf32>
    %47 = vector.broadcast %46 : vector<32x1xf32> to vector<32x128xf32>
    %48 = arith.mulf %47, %37 : vector<32x128xf32>
    %49 = arith.addf %32, %48 : vector<32x128xf32>
    %50 = vector.broadcast %20 : vector<32x1xf32> to vector<32x128xf32>
    %51 = arith.mulf %50, %37 : vector<32x128xf32>
    %cst_23 = arith.constant dense<0.000000e+00> : vector<32x128xf32>
    %52 = tpu.matmul %13, %51, %cst_23 {dimension_numbers = #tpu.dot_dimension_numbers<[1], [0], [0], [1], [0, 0, 1, 1], [], []>} : vector<32x32xf32>, vector<32x128xf32>, vector<32x128xf32> -> vector<32x128xf32>
    %53 = vector.broadcast %20 : vector<32x1xf32> to vector<32x128xf32>
    %54 = arith.mulf %53, %52 : vector<32x128xf32>
    %55 = vector.broadcast %21 : vector<1x128xf32> to vector<32x128xf32>
    %56 = arith.mulf %54, %55 : vector<32x128xf32>
    %cst_24 = arith.constant dense<0.000000e+00> : vector<32xf32>
    %57 = vector.multi_reduction <add>, %56, %cst_24 [1] : vector<32x128xf32> to vector<32xf32>
    %58 = vector.shape_cast %57 : vector<32xf32> to vector<32x1xf32>
    %59 = arith.negf %58 : vector<32x1xf32>
    %60 = math.exp %59 : vector<32x1xf32>
    %cst_25 = arith.constant 1.000000e+00 : f32
    %61 = vector.broadcast %cst_25 : f32 to vector<32x1xf32>
    %62 = arith.addf %61, %60 : vector<32x1xf32>
    %63 = arith.divf %61, %62 : vector<32x1xf32>
    %64 = vector.broadcast %63 : vector<32x1xf32> to vector<32x128xf32>
    %65 = arith.mulf %64, %54 : vector<32x128xf32>
    %66 = arith.addf %49, %65 : vector<32x128xf32>
    %67 = vector.broadcast %20 : vector<32x1xf32> to vector<32x128xf32>
    %68 = arith.mulf %67, %54 : vector<32x128xf32>
    %cst_26 = arith.constant dense<0.000000e+00> : vector<32x128xf32>
    %69 = tpu.matmul %13, %68, %cst_26 {dimension_numbers = #tpu.dot_dimension_numbers<[1], [0], [0], [1], [0, 0, 1, 1], [], []>} : vector<32x32xf32>, vector<32x128xf32>, vector<32x128xf32> -> vector<32x128xf32>
    %70 = vector.broadcast %20 : vector<32x1xf32> to vector<32x128xf32>
    %71 = arith.mulf %70, %69 : vector<32x128xf32>
    %72 = vector.broadcast %21 : vector<1x128xf32> to vector<32x128xf32>
    %73 = arith.mulf %71, %72 : vector<32x128xf32>
    %cst_27 = arith.constant dense<0.000000e+00> : vector<32xf32>
    %74 = vector.multi_reduction <add>, %73, %cst_27 [1] : vector<32x128xf32> to vector<32xf32>
    %75 = vector.shape_cast %74 : vector<32xf32> to vector<32x1xf32>
    %76 = arith.negf %75 : vector<32x1xf32>
    %77 = math.exp %76 : vector<32x1xf32>
    %cst_28 = arith.constant 1.000000e+00 : f32
    %78 = vector.broadcast %cst_28 : f32 to vector<32x1xf32>
    %79 = arith.addf %78, %77 : vector<32x1xf32>
    %80 = arith.divf %78, %79 : vector<32x1xf32>
    %81 = vector.broadcast %80 : vector<32x1xf32> to vector<32x128xf32>
    %82 = arith.mulf %81, %71 : vector<32x128xf32>
    %83 = arith.addf %66, %82 : vector<32x128xf32>
    %84 = vector.broadcast %20 : vector<32x1xf32> to vector<32x128xf32>
    %85 = arith.mulf %84, %71 : vector<32x128xf32>
    %cst_29 = arith.constant dense<0.000000e+00> : vector<32x128xf32>
    %86 = tpu.matmul %13, %85, %cst_29 {dimension_numbers = #tpu.dot_dimension_numbers<[1], [0], [0], [1], [0, 0, 1, 1], [], []>} : vector<32x32xf32>, vector<32x128xf32>, vector<32x128xf32> -> vector<32x128xf32>
    %87 = vector.broadcast %20 : vector<32x1xf32> to vector<32x128xf32>
    %88 = arith.mulf %87, %86 : vector<32x128xf32>
    %89 = vector.broadcast %21 : vector<1x128xf32> to vector<32x128xf32>
    %90 = arith.mulf %88, %89 : vector<32x128xf32>
    %cst_30 = arith.constant dense<0.000000e+00> : vector<32xf32>
    %91 = vector.multi_reduction <add>, %90, %cst_30 [1] : vector<32x128xf32> to vector<32xf32>
    %92 = vector.shape_cast %91 : vector<32xf32> to vector<32x1xf32>
    %93 = arith.negf %92 : vector<32x1xf32>
    %94 = math.exp %93 : vector<32x1xf32>
    %cst_31 = arith.constant 1.000000e+00 : f32
    %95 = vector.broadcast %cst_31 : f32 to vector<32x1xf32>
    %96 = arith.addf %95, %94 : vector<32x1xf32>
    %97 = arith.divf %95, %96 : vector<32x1xf32>
    %98 = vector.broadcast %97 : vector<32x1xf32> to vector<32x128xf32>
    %99 = arith.mulf %98, %88 : vector<32x128xf32>
    %100 = arith.addf %83, %99 : vector<32x128xf32>
    %c0_32 = arith.constant 0 : index
    %c0_33 = arith.constant 0 : index
    %101 = vector.load %arg7[%c0_32, %c0_33] : memref<32x128xf32, #tpu.memory_space<vmem>>, vector<32x128xf32>
    tpu.vector_store %arg7[%c0_32, %c0_33], %100 {strides = array<i32>} : memref<32x128xf32, #tpu.memory_space<vmem>>, vector<32x128xf32>,
    return
  }
}

</mosaic_0001>

<bundles_post_ra>
// kernel: tpu_custom_call.1
= control target key start
LH: loop header
LB: loop body
LE: loop exit
PB: predicated region body
PF: predicated region fallthrough
CT: control target
= control target key end

     0   :  { %12 = vsyncpa [#allocation3], 0  ;;  %s1877_s0 = inlined_call_operand.hbm [shape: f32[32,32], index: 0, kind: input, shape index: {}]   ;;  %s1878_s1 = inlined_call_operand.hbm [shape: f32[32,128], index: 1, kind: input, shape index: {}]   ;;  %s1879_s2 = inlined_call_operand.hbm [shape: f32[128,128], index: 2, kind: input, shape index: {}]   ;;  %s1880_s3 = inlined_call_operand.vmem [shape: f32[1,128], index: 3, kind: input, shape index: {}]   ;;  %s1881_s4 = inlined_call_operand.hbm [shape: f32[128,128], index: 4, kind: input, shape index: {}]   ;;  %s1882_s5 = inlined_call_operand.vmem [shape: f32[1,128], index: 5, kind: input, shape index: {}]   ;;  %s1883_s6 = inlined_call_operand.vmem [shape: f32[1,128], index: 6, kind: input, shape index: {}]   ;;  %s1884_s7 = inlined_call_operand.hbm [shape: f32[32,128], index: 7, kind: output, shape index: {}]  }
   0x1   :  { %13 = vsyncpa [#allocation6], 0 }
   0x2   :  { %14 = vsyncpa [#allocation9], 0 }
   0x3   :  { %15 = vsyncpa [#allocation4], 0  ;;  %s1517_s24 = smov [#allocation5]   ;;  %s1518_s26 = smov [#allocation2]  }
   0x4   :  { %s33_s25 = sshll.u32 %s1517_s24, 4  ;;  %s21_s27 = sshll.u32 %s1518_s26, 4  ;;  %s34_s25 = int_to_ptr.vmem [resolvable:$true] %s33_s25  ;;  %s1564_s27 = int_to_ptr.vmem [resolvable:$true] %s21_s27 }
   0x5   :  { %s1399_s30 = scalar_lea.hbm %s1878_s1, 512 }
   0x6   :  { %p1400_p0 = scmp.ne.s32.totalorder %s1878_s1, %s1399_s30  ;;  %p1403_p1 = scmp.lt.u32.totalorder %s1399_s30, %s1878_s1 }
   0x8   :  { %p1405_p2 = pnand %p1403_p1, %p1400_p0 }
   0xa   :  { %1408 = shalt.err (!%p1405_p2)
}
   0xb   :  { %s1409_s12 = scalar_lea.vmem %s34_s25, 512  ;;  %p1414_p4 = scmp.lt.s32.totalorder %s34_s25, %s34_s25 }
   0xc   :  { %p1410_p3 = scmp.ne.s32.totalorder %s34_s25, %s1409_s12  ;;  %p1415_p5 = scmp.lt.s32.totalorder %s1409_s12, %s1409_s12 }
   0xe   :  { %p1416_p6 = por %p1415_p5, %p1414_p4 }
  0x10   :  { %p1417_p7 = pnand %p1416_p6, %p1410_p3 }
  0x12   :  { %1420 = shalt.err (!%p1417_p7)
}
  0x13   :  { %s1519_s13 = smov 128   ;;  %s1520_s14 = smov 8  }
  0x14   :  { %39 = dma.hbm_to_vmem [thread:$0]  %s1878_s1, 512, %s34_s25, [#allocation6], %s1519_s13, %s1519_s13, %s1520_s14  }
  0x15   :  { %s1421_s19 = scalar_lea.hbm %s1877_s0, 512 }
  0x16   :  { %p1422_p8 = scmp.ne.s32.totalorder %s1877_s0, %s1421_s19  ;;  %p1425_p9 = scmp.lt.u32.totalorder %s1421_s19, %s1877_s0 }
  0x18   :  { %p1427_p10 = pnand %p1425_p9, %p1422_p8 }
  0x1a   :  { %1430 = shalt.err (!%p1427_p10)
}
  0x1b   :  { %s1431_s24 = scalar_lea.vmem %s1564_s27, 512  ;;  %p1436_p12 = scmp.lt.s32.totalorder %s1564_s27, %s1564_s27 }
  0x1c   :  { %p1432_p11 = scmp.ne.s32.totalorder %s1564_s27, %s1431_s24  ;;  %p1437_p13 = scmp.lt.s32.totalorder %s1431_s24, %s1431_s24 }
  0x1e   :  { %p1438_p0 = por %p1437_p13, %p1436_p12 }
  0x20   :  { %p1439_p1 = pnand %p1438_p0, %p1432_p11 }
  0x22   :  { %1442 = shalt.err (!%p1439_p1)
}
  0x23   :  { %27 = dma.hbm_to_vmem [thread:$0]  %s1877_s0, 512, %s1564_s27, [#allocation3], %s1519_s13, %s1519_s13, %s1520_s14  }
  0x24   :  { %s1521_s26 = smov [#allocation7]   ;;  %s1522_s29 = smov [#allocation8]  }
  0x25   :  { %s45_s28 = sshll.u32 %s1521_s26, 4  ;;  %s59_s30 = sshll.u32 %s1522_s29, 4  ;;  %s46_s28 = int_to_ptr.vmem [resolvable:$true] %s45_s28  ;;  %s1601_s30 = int_to_ptr.vmem [resolvable:$true] %s59_s30 }
  0x26   :  { %s1443_s10 = scalar_lea.hbm %s1879_s2, 2048 }
  0x27   :  { %p1444_p2 = scmp.ne.s32.totalorder %s1879_s2, %s1443_s10  ;;  %p1447_p3 = scmp.lt.u32.totalorder %s1443_s10, %s1879_s2 }
  0x29   :  { %p1449_p4 = pnand %p1447_p3, %p1444_p2 }
  0x2b   :  { %1452 = shalt.err (!%p1449_p4)
}
  0x2c   :  { %s1453_s0 = scalar_lea.vmem %s46_s28, 2048  ;;  %p1458_p6 = scmp.lt.s32.totalorder %s46_s28, %s46_s28 }
  0x2d   :  { %p1454_p5 = scmp.ne.s32.totalorder %s46_s28, %s1453_s0  ;;  %p1459_p7 = scmp.lt.s32.totalorder %s1453_s0, %s1453_s0 }
  0x2f   :  { %p1460_p8 = por %p1459_p7, %p1458_p6 }
  0x31   :  { %p1461_p9 = pnand %p1460_p8, %p1454_p5 }
  0x33   :  { %1464 = shalt.err (!%p1461_p9)
}
  0x34   :  { %51 = dma.hbm_to_vmem [thread:$0]  %s1879_s2, 2048, %s46_s28, [#allocation6], %s1519_s13, %s1519_s13, %s1520_s14  }
  0x35   :  { %s1465_s20 = scalar_lea.hbm %s1881_s4, 2048 }
  0x36   :  { %p1466_p10 = scmp.ne.s32.totalorder %s1881_s4, %s1465_s20  ;;  %p1469_p11 = scmp.lt.u32.totalorder %s1465_s20, %s1881_s4 }
  0x38   :  { %p1471_p12 = pnand %p1469_p11, %p1466_p10 }
  0x3a   :  { %1474 = shalt.err (!%p1471_p12)
}
  0x3b   :  { %s1475_s1 = scalar_lea.vmem %s1601_s30, 2048  ;;  %p1480_p0 = scmp.lt.s32.totalorder %s1601_s30, %s1601_s30 }
  0x3c   :  { %p1476_p13 = scmp.ne.s32.totalorder %s1601_s30, %s1475_s1  ;;  %p1481_p1 = scmp.lt.s32.totalorder %s1475_s1, %s1475_s1 }
  0x3e   :  { %p1482_p2 = por %p1481_p1, %p1480_p0 }
  0x40   :  { %p1483_p3 = pnand %p1482_p2, %p1476_p13 }
  0x42   :  { %1486 = shalt.err (!%p1483_p3)
}
  0x43   :  { %65 = dma.hbm_to_vmem [thread:$0]  %s1881_s4, 2048, %s1601_s30, [#allocation9], %s1519_s13, %s1519_s13, %s1520_s14  }
  0x44   :  { %1509 = dma.done.wait [#allocation3], 512  }
  0x45   :  { %1510 = vsyncadd [#allocation3], 4294966784 }
  0x46   :  { %1511 = dma.done.wait [#allocation6], 2560  }
  0x47   :  { %1512 = vsyncadd [#allocation6], 4294964736 }
  0x48   :  { %1513 = dma.done.wait [#allocation9], 2048  }
  0x49   :  { %1514 = vsyncadd [#allocation9], 4294965248  ;;  %v86_v0 = vld [vmem:[#allocation7] sm:$0xff]  ;;  %v87_v1 = vld [vmem:[#allocation7 + $0x8] sm:$0xff]  ;;  %vm310_vm0 = vcmask 261120  }
  0x4a   :  { %v88_v2 = vld [vmem:[#allocation7 + $0x10] sm:$0xff]  ;;  %v1208_v3 = vpack.c.bf16 %v87_v1, %v86_v0  ;;  %v89_v4 = vld [vmem:[#allocation7 + $0x18] sm:$0xff]  ;;  %v90_v6 = vld [vmem:[#allocation7 + $0x20] sm:$0xff] }
  0x4b   :  { %v1212_v5 = vpack.c.bf16 %v89_v4, %v88_v2  ;;  %v91_v7 = vld [vmem:[#allocation7 + $0x28] sm:$0xff]  ;;  %v82_v9 = vld [vmem:[#allocation5] sm:$0xff]  ;;  %v92_v10 = vld [vmem:[#allocation7 + $0x30] sm:$0xff] }
  0x4c   :  { %1209 = vmatprep.subr.bf16.mxu0 %v1208_v3  ;;  %v1216_v8 = vpack.c.bf16 %v91_v7, %v90_v6  ;;  %v93_v11 = vld [vmem:[#allocation7 + $0x38] sm:$0xff]  ;;  %1108 = vmatprep.mubr.f32.mxu0 %v82_v9  ;;  %v198_v12 = vld [vmem:[#allocation8] sm:$0xff]  ;;  %v199_v13 = vld [vmem:[#allocation8 + $0x8] sm:$0xff] }
  0x4d   :  { %1211 = vmatpush3.bf16.msra.mxu0 %v1208_v3  ;;  %v200_v14 = vld [vmem:[#allocation8 + $0x10] sm:$0xff]  ;;  %v201_v15 = vld [vmem:[#allocation8 + $0x18] sm:$0xff]  ;;  %v1240_v16 = vpack.c.bf16 %v199_v13, %v198_v12  ;;  %v1220_v18 = vpack.c.bf16 %v93_v11, %v92_v10  ;;  %v202_v19 = vld [vmem:[#allocation8 + $0x20] sm:$0xff] }
  0x4e   :  { %1213 = vmatprep.subr.bf16.mxu0 %v1212_v5  ;;  %v1244_v17 = vpack.c.bf16 %v201_v15, %v200_v14  ;;  %v203_v20 = vld [vmem:[#allocation8 + $0x28] sm:$0xff]  ;;  %v94_v21 = vld [vmem:[#allocation7 + $0x40] sm:$0xff]  ;;  %v204_v25 = vld [vmem:[#allocation8 + $0x30] sm:$0xff] }
  0x4f   :  { %v95_v22 = vld [vmem:[#allocation7 + $0x48] sm:$0xff]  ;;  %1241 = vmatprep.subr.bf16.mxu1 %v1240_v16  ;;  %v1248_v23 = vpack.c.bf16 %v203_v20, %v202_v19  ;;  %v205_v26 = vld [vmem:[#allocation8 + $0x38] sm:$0xff]  ;;  %v96_v27 = vld [vmem:[#allocation7 + $0x50] sm:$0xff] }
  0x50   :  { %1243 = vmatpush3.bf16.msra.mxu1 %v1240_v16  ;;  %v1224_v24 = vpack.c.bf16 %v95_v22, %v94_v21  ;;  %v97_v28 = vld [vmem:[#allocation7 + $0x58] sm:$0xff]  ;;  %v1252_v29 = vpack.c.bf16 %v205_v26, %v204_v25  ;;  %v206_v31 = vld [vmem:[#allocation8 + $0x40] sm:$0xff]  ;;  %v207_v32 = vld [vmem:[#allocation8 + $0x48] sm:$0xff] }
  0x51   :  { %1215 = vmatpush3.bf16.msra.mxu0 %v1212_v5  ;;  %1245 = vmatprep.subr.bf16.mxu1 %v1244_v17  ;;  %v1228_v30 = vpack.c.bf16 %v97_v28, %v96_v27  ;;  %v98_v33 = vld [vmem:[#allocation7 + $0x60] sm:$0xff]  ;;  %v99_v34 = vld [vmem:[#allocation7 + $0x68] sm:$0xff]  ;;  %v1256_v35 = vpack.c.bf16 %v207_v32, %v206_v31  ;;  %v208_v37 = vld [vmem:[#allocation8 + $0x50] sm:$0xff] }
  0x52   :  { %1217 = vmatprep.subr.bf16.mxu0 %v1216_v8  ;;  %v1232_v36 = vpack.c.bf16 %v99_v34, %v98_v33  ;;  %v209_v38 = vld [vmem:[#allocation8 + $0x58] sm:$0xff]  ;;  %v100_v39 = vld [vmem:[#allocation7 + $0x70] sm:$0xff]  ;;  %v210_v43 = vld [vmem:[#allocation8 + $0x60] sm:$0xff] }
  0x53   :  { %v101_v40 = vld [vmem:[#allocation7 + $0x78] sm:$0xff]  ;;  %v1260_v41 = vpack.c.bf16 %v209_v38, %v208_v37  ;;  %v211_v44 = vld [vmem:[#allocation8 + $0x68] sm:$0xff]  ;;  %v84_v47 = vld [vmem:[#allocation5 + $0x10] sm:$0xff] }
  0x54   :  { %1247 = vmatpush3.bf16.msra.mxu1 %v1244_v17  ;;  %v1236_v42 = vpack.c.bf16 %v101_v40, %v100_v39  ;;  %v1264_v45 = vpack.c.bf16 %v211_v44, %v210_v43  ;;  %v83_v46 = vld [vmem:[#allocation5 + $0x8] sm:$0xff]  ;;  %v85_v48 = vld [vmem:[#allocation5 + $0x18] sm:$0xff]  ;;  %v212_v49 = vld [vmem:[#allocation8 + $0x70] sm:$0xff] }
  0x55   :  { %1219 = vmatpush3.bf16.msra.mxu0 %v1216_v8  ;;  %1249 = vmatprep.subr.bf16.mxu1 %v1248_v23  ;;  %v213_v50 = vld [vmem:[#allocation8 + $0x78] sm:$0xff]  ;;  %v1638_v52 = vld [vmem:[#allocation2] sm:$0xff]  ;;  %v1640_v53 = vld [vmem:[#allocation2 + $0x10] sm:$0xff] }
  0x56   :  { %1221 = vmatprep.subr.bf16.mxu0 %v1220_v18  ;;  %v1268_v51 = vpack.c.bf16 %v213_v50, %v212_v49  ;;  %v1642_v54 = vld [vmem:[#allocation2 + $0x8] sm:$0xff]  ;;  %v311_v55 = vsel %vm310_vm0, %v1638_v52, 0.0  ;;  %v317_v56 = vsel %vm310_vm0, %v1640_v53, 0.0  ;;  %v1648_v57 = vld [vmem:[#allocation2 + $0x18] sm:$0xff]  ;;  %v965_v60 = vld [vmem:[%s1880_s3] ss:$0 sm:$0xff] }
  0x57   :  { %312 = vadd.xlane.f32.xlu0 %v311_v55  ;;  %318 = vadd.xlane.f32.xlu1 %v317_v56  ;;  %v314_v58 = vsel %vm310_vm0, %v1642_v54, 0.0  ;;  %v320_v59 = vsel %vm310_vm0, %v1648_v57, 0.0  ;;  %v966_v13 = vld [vmem:[%s1882_s5] ss:$0 sm:$0xff]  ;;  %s1523_s5 = smov [#allocation10]  }
  0x58   :  { %1251 = vmatpush3.bf16.msra.mxu1 %v1248_v23  ;;  %v1667_v17 = vld [vmem:[%s1883_s6] ss:$0 sm:$0xff]  ;;  %s951_s6 = sshll.u32 %s1523_s5, 4  ;;  %s952_s6 = int_to_ptr.vmem [resolvable:$true] %s951_s6 }
  0x59   :  { %1223 = vmatpush3.bf16.msra.mxu0 %v1220_v18  ;;  %1253 = vmatprep.subr.bf16.mxu1 %v1252_v29  ;;  %s1487_s8 = scalar_lea.vmem %s952_s6, 512  ;;  %p1492_p5 = scmp.lt.s32.totalorder %s952_s6, %s952_s6 }
  0x5a   :  { %1225 = vmatprep.subr.bf16.mxu0 %v1224_v24  ;;  %p1488_p4 = scmp.ne.s32.totalorder %s952_s6, %s1487_s8  ;;  %p1493_p6 = scmp.lt.s32.totalorder %s1487_s8, %s1487_s8 }
  0x5b   :  { %315 = vadd.xlane.f32.xlu0 %v314_v58  ;;  %321 = vadd.xlane.f32.xlu1 %v320_v59 }
  0x5c   :  { %1255 = vmatpush3.bf16.msra.mxu1 %v1252_v29  ;;  %p1494_p7 = por %p1493_p6, %p1492_p5 }
  0x5d   :  { %1227 = vmatpush3.bf16.msra.mxu0 %v1224_v24  ;;  %1257 = vmatprep.subr.bf16.mxu1 %v1256_v35 }
  0x5e   :  { %1229 = vmatprep.subr.bf16.mxu0 %v1228_v30  ;;  %p1495_p8 = pnand %p1494_p7, %p1488_p4 }
  0x60   :  { %1259 = vmatpush3.bf16.msra.mxu1 %v1256_v35 }
  0x61   :  { %1231 = vmatpush3.bf16.msra.mxu0 %v1228_v30  ;;  %1261 = vmatprep.subr.bf16.mxu1 %v1260_v41 }
  0x62   :  { %1233 = vmatprep.subr.bf16.mxu0 %v1232_v36 }
  0x64   :  { %1263 = vmatpush3.bf16.msra.mxu1 %v1260_v41 }
  0x65   :  { %1235 = vmatpush3.bf16.msra.mxu0 %v1232_v36  ;;  %1265 = vmatprep.subr.bf16.mxu1 %v1264_v45 }
  0x66   :  { %1237 = vmatprep.subr.bf16.mxu0 %v1236_v42 }
  0x68   :  { %1267 = vmatpush3.bf16.msra.mxu1 %v1264_v45 }
  0x69   :  { %1239 = vmatpush3.bf16.msra.mxu0 %v1236_v42  ;;  %1269 = vmatprep.subr.bf16.mxu1 %v1268_v51 }
  0x6c   :  { %1109 = vmatmul.mubr.f32.vlgmr.msra.gmra.mrb[0].mxu0 %v83_v46  ;;  %1271 = vmatpush3.bf16.msra.mxu1 %v1268_v51 }
  0x6d   :  { %1111 = vmatprep.mubr.f32.mxu0 %v84_v47 }
  0x70   :  { %1112 = vmatmul.mubr.f32.gmra.mrb[2].mxu0 %v85_v48 }
  0x71   :  { %1160 = vmatprep.mubr.msk.f32.mxu0 %vm310_vm0, %v1638_v52 }
  0xe4   :  { %v313_v9 = vpop.xlane.xlu0 %312  ;;  %v319_v10 = vpop.xlane.xlu1 %318 }
  0xe5   :  { %vm323_vm2 = vcmp.gt.f32.partialorder %v313_v9, 0.0  ;;  %vm325_vm4 = vcmp.gt.f32.partialorder %v319_v10, 0.0 }
  0xe8   :  { %v316_v11 = vpop.xlane.xlu0 %315  ;;  %v322_v12 = vpop.xlane.xlu1 %321 }
  0xe9   :  { %1311 = vrsqrt.f32 %v316_v11  ;;  %vm324_vm1 = vcmp.gt.f32.partialorder %v316_v11, 0.0  ;;  %vm326_vm3 = vcmp.gt.f32.partialorder %v322_v12, 0.0 }
  0xea   :  { %1313 = vrsqrt.f32 %v313_v9 }
  0xeb   :  { %1315 = vrsqrt.f32 %v322_v12 }
  0xec   :  { %1317 = vrsqrt.f32 %v319_v10 }
  0xf3   :  { %v1312_v14 = vpop.eup %1311 }
  0xf4   :  { %v1314_v15 = vpop.eup %1313  ;;  %v1671_v20 = vsel %vm324_vm1, %v1312_v14, 0.0 }
  0xf5   :  { %v1316_v22 = vpop.eup %1315  ;;  %v1675_v23 = vsel %vm323_vm2, %v1314_v15, 0.0 }
  0xf6   :  { %v1318_v26 = vpop.eup %1317  ;;  %v1687_v32 = vsel %vm326_vm3, %v1316_v22, 0.0 }
  0xf7   :  { %v1691_v35 = vsel %vm325_vm4, %v1318_v26, 0.0 }
 0x13f   :  { %v1110_v61 = vpop.f32.mrb[0].mxu0 }
 0x140   :  { %v181_v62 = vadd.f32 %v1110_v61, %v965_v60  ;;  %v175_v63 = vpop.f32.mrb[1].mxu0 }
 0x141   :  { %v176_v0 = vadd.f32 %v965_v60, %v175_v63 }
 0x142   :  { %v195_v3 = vmax.f32 %v181_v62, 0.0 }
 0x143   :  { %v1113_v1 = vpop.f32.mrb[2].mxu0  ;;  %v194_v2 = vmax.f32 %v176_v0, 0.0 }
 0x144   :  { %v191_v4 = vadd.f32 %v1113_v1, %v965_v60  ;;  %v185_v5 = vpop.f32.mrb[3].mxu0 }
 0x145   :  { %v186_v6 = vadd.f32 %v965_v60, %v185_v5  ;;  %1146 = vmatprep.mubr.f32.mxu1 %v194_v2 }
 0x146   :  { %1147 = vmatmul.mubr.f32.vlgmr.msra.gmra.mrb[0].mxu1 %v195_v3  ;;  %v197_v8 = vmax.f32 %v191_v4, 0.0 }
 0x147   :  { %v196_v7 = vmax.f32 %v186_v6, 0.0 }
 0x149   :  { %1149 = vmatprep.mubr.f32.mxu1 %v196_v7 }
 0x14a   :  { %1150 = vmatmul.mubr.f32.gmra.mrb[2].mxu1 %v197_v8 }
 0x14b   :  { %1174 = vmatprep.mubr.msk.f32.mxu1 %vm310_vm0, %v1638_v52 }
 0x219   :  { %v1148_v16 = vpop.f32.mrb[0].mxu1 }
 0x21a   :  { %v1669_v18 = vadd.f32 %v1148_v16, %v966_v13  ;;  %v287_v19 = vpop.f32.mrb[1].mxu1 }
 0x21b   :  { %v1673_v21 = vadd.f32 %v966_v13, %v287_v19 }
 0x21c   :  { %v383_v24 = vmul.f32 %v1671_v20, %v1669_v18  ;;  %v343_v25 = vmul.f32 %v1667_v17, %v1669_v18 }
 0x21d   :  { %v382_v27 = vmul.f32 %v1675_v23, %v1673_v21  ;;  %v1151_v28 = vpop.f32.mrb[2].mxu1  ;;  %v342_v29 = vmul.f32 %v1667_v17, %v1673_v21 }
 0x21e   :  { %v1685_v30 = vadd.f32 %v1151_v28, %v966_v13  ;;  %348 = vadd.xlane.f32.xlu1 %v343_v25  ;;  %v297_v31 = vpop.f32.mrb[3].mxu1 }
 0x21f   :  { %v1689_v33 = vadd.f32 %v966_v13, %v297_v31  ;;  %346 = vadd.xlane.f32.xlu0 %v342_v29  ;;  %v1272_v34 = vpack.c.bf16 %v383_v24, %v382_v27 }
 0x220   :  { %v385_v36 = vmul.f32 %v1687_v32, %v1685_v30  ;;  %v345_v37 = vmul.f32 %v1667_v17, %v1685_v30 }
 0x221   :  { %v384_v38 = vmul.f32 %v1691_v35, %v1689_v33  ;;  %1273 = vmatprep.subr.bf16.mxu0 %v1272_v34  ;;  %v344_v39 = vmul.f32 %v1667_v17, %v1689_v33 }
 0x222   :  { %352 = vadd.xlane.f32.xlu1 %v345_v37  ;;  %1275 = vmatpush3.bf16.msra.mxu0 %v1272_v34 }
 0x223   :  { %350 = vadd.xlane.f32.xlu0 %v344_v39  ;;  %v1276_v40 = vpack.c.bf16 %v385_v36, %v384_v38 }
 0x225   :  { %1277 = vmatprep.subr.bf16.mxu0 %v1276_v40 }
 0x226   :  { %1279 = vmatpush3.bf16.msra.mxu0 %v1276_v40 }
 0x229   :  { %1161 = vmatmul.mubr.msk.f32.vlgmr.msra.gmra.mrb[4].mxu0 %vm310_vm0, %v1642_v54 }
 0x22a   :  { %1163 = vmatprep.mubr.msk.f32.mxu0 %vm310_vm0, %v1640_v53 }
 0x22d   :  { %1164 = vmatmul.mubr.msk.f32.gmra.mrb[6].mxu0 %vm310_vm0, %v1648_v57 }
 0x22e   :  { %1188 = vmatprep.mubr.msk.f32.mxu0 %vm310_vm0, %v1638_v52 }
 0x2fc   :  { %v1162_v41 = vpop.f32.mrb[4].mxu0 }
 0x2fd   :  { %v1710_v42 = vmul.f32 %v1162_v41, %v1671_v20  ;;  %v464_v43 = vpop.f32.mrb[5].mxu0 }
 0x2fe   :  { %v1713_v44 = vmul.f32 %v464_v43, %v1675_v23 }
 0x2ff   :  { %v532_v45 = vmul.f32 %v1710_v42, %v1671_v20  ;;  %v488_v46 = vmul.f32 %v1667_v17, %v1710_v42 }
 0x300   :  { %v531_v47 = vmul.f32 %v1713_v44, %v1675_v23  ;;  %v1165_v48 = vpop.f32.mrb[6].mxu0  ;;  %v487_v49 = vmul.f32 %v1667_v17, %v1713_v44 }
 0x301   :  { %v1724_v50 = vmul.f32 %v1165_v48, %v1687_v32  ;;  %493 = vadd.xlane.f32.xlu1 %v488_v46  ;;  %v474_v51 = vpop.f32.mrb[7].mxu0 }
 0x302   :  { %v1727_v55 = vmul.f32 %v474_v51, %v1691_v35  ;;  %491 = vadd.xlane.f32.xlu0 %v487_v49  ;;  %v1280_v56 = vpack.c.bf16 %v532_v45, %v531_v47 }
 0x303   :  { %v534_v58 = vmul.f32 %v1724_v50, %v1687_v32  ;;  %v490_v59 = vmul.f32 %v1667_v17, %v1724_v50 }
 0x304   :  { %v533_v60 = vmul.f32 %v1727_v55, %v1691_v35  ;;  %1281 = vmatprep.subr.bf16.mxu1 %v1280_v56  ;;  %v489_v61 = vmul.f32 %v1667_v17, %v1727_v55 }
 0x305   :  { %1283 = vmatpush3.bf16.msra.mxu1 %v1280_v56  ;;  %497 = vadd.xlane.f32.xlu1 %v490_v59  ;;  %v347_v59 = vpop.xlane.xlu0 %346 }
 0x306   :  { %495 = vadd.xlane.f32.xlu0 %v489_v61  ;;  %v1284_v62 = vpack.c.bf16 %v534_v58, %v533_v60  ;;  %v349_v58 = vpop.xlane.xlu1 %348 }
 0x308   :  { %1285 = vmatprep.subr.bf16.mxu1 %v1284_v62 }
 0x309   :  { %1287 = vmatpush3.bf16.msra.mxu1 %v1284_v62  ;;  %v351_v61 = vpop.xlane.xlu0 %350 }
 0x30a   :  { %v353_v60 = vpop.xlane.xlu1 %352 }
 0x30c   :  { %1175 = vmatmul.mubr.msk.f32.vlgmr.msra.gmra.mrb[4].mxu1 %vm310_vm0, %v1642_v54 }
 0x30d   :  { %1177 = vmatprep.mubr.msk.f32.mxu1 %vm310_vm0, %v1640_v53 }
 0x310   :  { %1178 = vmatmul.mubr.msk.f32.gmra.mrb[6].mxu1 %vm310_vm0, %v1648_v57 }
 0x311   :  { %1202 = vmatprep.mubr.msk.f32.mxu1 %vm310_vm0, %v1638_v52 }
 0x38f   :  { %v492_v62 = vpop.xlane.xlu0 %491 }
 0x3df   :  { %v1176_v63 = vpop.f32.mrb[4].mxu1 }
 0x3e0   :  { %v1746_v0 = vmul.f32 %v1176_v63, %v1671_v20  ;;  %v601_v1 = vpop.f32.mrb[5].mxu1  ;;  %v969_v63 = vmul.f32 -1.442695, %v349_v58 }
 0x3e1   :  { %v1749_v2 = vmul.f32 %v601_v1, %v1675_v23  ;;  %v968_v1 = vmul.f32 -1.442695, %v347_v59 }
 0x3e2   :  { %v669_v3 = vmul.f32 %v1746_v0, %v1671_v20  ;;  %v625_v4 = vmul.f32 %v1667_v17, %v1746_v0  ;;  %1319 = vpow2.f32 %v969_v63 }
 0x3e3   :  { %v668_v5 = vmul.f32 %v1749_v2, %v1675_v23  ;;  %v1179_v6 = vpop.f32.mrb[6].mxu1  ;;  %v624_v52 = vmul.f32 %v1667_v17, %v1749_v2  ;;  %1321 = vpow2.f32 %v968_v1 }
 0x3e4   :  { %v1760_v7 = vmul.f32 %v1179_v6, %v1687_v32  ;;  %630 = vadd.xlane.f32.xlu1 %v625_v4  ;;  %v611_v8 = vpop.f32.mrb[7].mxu1  ;;  %v496_v4 = vpop.xlane.xlu0 %495 }
 0x3e5   :  { %v1763_v9 = vmul.f32 %v611_v8, %v1691_v35  ;;  %628 = vadd.xlane.f32.xlu0 %v624_v52  ;;  %v1288_v10 = vpack.c.bf16 %v669_v3, %v668_v5  ;;  %v970_v52 = vmul.f32 -1.442695, %v351_v61 }
 0x3e6   :  { %v671_v11 = vmul.f32 %v1760_v7, %v1687_v32  ;;  %v627_v12 = vmul.f32 %v1667_v17, %v1760_v7 }
 0x3e7   :  { %v670_v13 = vmul.f32 %v1763_v9, %v1691_v35  ;;  %1289 = vmatprep.subr.bf16.mxu0 %v1288_v10  ;;  %v626_v14 = vmul.f32 %v1667_v17, %v1763_v9 }
 0x3e8   :  { %1291 = vmatpush3.bf16.msra.mxu0 %v1288_v10  ;;  %634 = vadd.xlane.f32.xlu1 %v627_v12  ;;  %v976_v10 = vmul.f32 -1.442695, %v492_v62 }
 0x3e9   :  { %632 = vadd.xlane.f32.xlu0 %v626_v14  ;;  %v1292_v15 = vpack.c.bf16 %v671_v11, %v670_v13 }
 0x3eb   :  { %1293 = vmatprep.subr.bf16.mxu0 %v1292_v15 }
 0x3ec   :  { %1295 = vmatpush3.bf16.msra.mxu0 %v1292_v15  ;;  %v1320_v8 = vpop.eup %1319 }
 0x3ed   :  { %v1322_v14 = vpop.eup %1321  ;;  %v367_v15 = vadd.f32 1.0, %v1320_v8 }
 0x3ef   :  { %1189 = vmatmul.mubr.msk.f32.vlgmr.msra.gmra.mrb[8].mxu0 %vm310_vm0, %v1642_v54 }
 0x3f0   :  { %1191 = vmatprep.mubr.msk.f32.mxu0 %vm310_vm0, %v1640_v53 }
 0x3f3   :  { %1192 = vmatmul.mubr.msk.f32.gmra.mrb[10].mxu0 %vm310_vm0, %v1648_v57 }
 0x472   :  { %v629_v6 = vpop.xlane.xlu0 %628 }
 0x476   :  { %v633_v13 = vpop.xlane.xlu0 %632 }
 0x4c2   :  { %v1190_v16 = vpop.f32.mrb[8].mxu0 }
 0x4c3   :  { %v1780_v19 = vmul.f32 %v1190_v16, %v1671_v20  ;;  %v738_v22 = vpop.f32.mrb[9].mxu0 }
 0x4c4   :  { %v1783_v24 = vmul.f32 %v738_v22, %v1675_v23  ;;  %v978_v22 = vmul.f32 -1.442695, %v496_v4 }
 0x4c5   :  { %v806_v25 = vmul.f32 %v1780_v19, %v1671_v20  ;;  %v762_v26 = vmul.f32 %v1667_v17, %v1780_v19 }
 0x4c6   :  { %v805_v27 = vmul.f32 %v1783_v24, %v1675_v23  ;;  %v1193_v28 = vpop.f32.mrb[10].mxu0  ;;  %v761_v29 = vmul.f32 %v1667_v17, %v1783_v24 }
 0x4c7   :  { %v1794_v31 = vmul.f32 %v1193_v28, %v1687_v32  ;;  %767 = vadd.xlane.f32.xlu1 %v762_v26  ;;  %v748_v34 = vpop.f32.mrb[11].mxu0  ;;  %v366_v28 = vadd.f32 1.0, %v1322_v14 }
 0x4c8   :  { %v1797_v36 = vmul.f32 %v748_v34, %v1691_v35  ;;  %765 = vadd.xlane.f32.xlu0 %v761_v29  ;;  %v1296_v37 = vpack.c.bf16 %v806_v25, %v805_v27  ;;  %v984_v34 = vmul.f32 -1.442695, %v629_v6 }
 0x4c9   :  { %v808_v38 = vmul.f32 %v1794_v31, %v1687_v32  ;;  %v764_v39 = vmul.f32 %v1667_v17, %v1794_v31 }
 0x4ca   :  { %v807_v40 = vmul.f32 %v1797_v36, %v1691_v35  ;;  %1297 = vmatprep.subr.bf16.mxu1 %v1296_v37  ;;  %v763_v41 = vmul.f32 %v1667_v17, %v1797_v36 }
 0x4cb   :  { %1299 = vmatpush3.bf16.msra.mxu1 %v1296_v37  ;;  %771 = vadd.xlane.f32.xlu1 %v764_v39 }
 0x4cc   :  { %769 = vadd.xlane.f32.xlu0 %v763_v41  ;;  %v1300_v43 = vpack.c.bf16 %v808_v38, %v807_v40 }
 0x4ce   :  { %1301 = vmatprep.subr.bf16.mxu1 %v1300_v43 }
 0x4cf   :  { %1303 = vmatpush3.bf16.msra.mxu1 %v1300_v43 }
 0x4d2   :  { %1203 = vmatmul.mubr.msk.f32.vlgmr.msra.gmra.mrb[8].mxu1 %vm310_vm0, %v1642_v54 }
 0x4d3   :  { %1205 = vmatprep.mubr.msk.f32.mxu1 %vm310_vm0, %v1640_v53 }
 0x4d6   :  { %1206 = vmatmul.mubr.msk.f32.gmra.mrb[10].mxu1 %vm310_vm0, %v1648_v57 }
 0x555   :  { %v766_v27 = vpop.xlane.xlu0 %765 }
 0x556   :  { %v992_v38 = vmul.f32 -1.442695, %v766_v27 }
 0x559   :  { %v770_v41 = vpop.xlane.xlu0 %769 }
 0x5a5   :  { %v1204_v45 = vpop.f32.mrb[8].mxu1 }
 0x5a6   :  { %v1814_v46 = vmul.f32 %v1204_v45, %v1671_v20  ;;  %v875_v47 = vpop.f32.mrb[9].mxu1  ;;  %v986_v45 = vmul.f32 -1.442695, %v633_v13 }
 0x5a7   :  { %v1817_v48 = vmul.f32 %v875_v47, %v1675_v23 }
 0x5a8   :  { %v899_v49 = vmul.f32 %v1667_v17, %v1814_v46 }
 0x5a9   :  { %v1207_v51 = vpop.f32.mrb[10].mxu1  ;;  %v898_v54 = vmul.f32 %v1667_v17, %v1817_v48 }
 0x5aa   :  { %v1824_v53 = vmul.f32 %v1207_v51, %v1687_v32  ;;  %904 = vadd.xlane.f32.xlu1 %v899_v49  ;;  %v885_v57 = vpop.f32.mrb[11].mxu1  ;;  %v494_v32 = vpop.xlane.xlu1 %493 }
 0x5ab   :  { %v1827_v56 = vmul.f32 %v885_v57, %v1691_v35  ;;  %902 = vadd.xlane.f32.xlu0 %v898_v54  ;;  %v971_v35 = vmul.f32 -1.442695, %v353_v60  ;;  %v994_v54 = vmul.f32 -1.442695, %v770_v41 }
 0x5ac   :  { %v901_v20 = vmul.f32 %v1667_v17, %v1824_v53 }
 0x5ad   :  { %v900_v23 = vmul.f32 %v1667_v17, %v1827_v56  ;;  %1323 = vpow2.f32 %v971_v35  ;;  %v977_v17 = vmul.f32 -1.442695, %v494_v32 }
 0x5ae   :  { %908 = vadd.xlane.f32.xlu1 %v901_v20  ;;  %v498_v3 = vpop.xlane.xlu1 %497  ;;  %1325 = vpow2.f32 %v970_v52 }
 0x5af   :  { %906 = vadd.xlane.f32.xlu0 %v900_v23  ;;  %v979_v12 = vmul.f32 -1.442695, %v498_v3  ;;  %1327 = vpow2.f32 %v977_v17 }
 0x5b0   :  { %1329 = vpow2.f32 %v976_v10 }
 0x5b1   :  { %1331 = vpow2.f32 %v979_v12 }
 0x5b2   :  { %v631_v5 = vpop.xlane.xlu1 %630  ;;  %1333 = vrcp.f32 %v367_v15 }
 0x5b3   :  { %v985_v26 = vmul.f32 -1.442695, %v631_v5  ;;  %1335 = vpow2.f32 %v978_v22 }
 0x5b5   :  { %1337 = vpow2.f32 %v985_v26 }
 0x5b6   :  { %v635_v11 = vpop.xlane.xlu1 %634  ;;  %1339 = vrcp.f32 %v366_v28 }
 0x5b7   :  { %v1324_v16 = vpop.eup %1323  ;;  %v987_v40 = vmul.f32 -1.442695, %v635_v11 }
 0x5b8   :  { %v369_v29 = vadd.f32 1.0, %v1324_v16  ;;  %v1326_v43 = vpop.eup %1325 }
 0x5b9   :  { %v1328_v47 = vpop.eup %1327  ;;  %v368_v20 = vadd.f32 1.0, %v1326_v43 }
 0x5ba   :  { %v768_v25 = vpop.xlane.xlu1 %767  ;;  %1341 = vrcp.f32 %v369_v29  ;;  %v1330_v51 = vpop.eup %1329  ;;  %v512_v23 = vadd.f32 1.0, %v1328_v47 }
 0x5bb   :  { %v993_v37 = vmul.f32 -1.442695, %v768_v25  ;;  %1343 = vpow2.f32 %v984_v34  ;;  %v1332_v57 = vpop.eup %1331  ;;  %v511_v59 = vadd.f32 1.0, %v1330_v51 }
 0x5bc   :  { %v1833_v58 = vpop.eup %1333  ;;  %v514_v61 = vadd.f32 1.0, %v1332_v57 }
 0x5bd   :  { %1345 = vpow2.f32 %v993_v37  ;;  %v1336_v60 = vpop.eup %1335 }
 0x5be   :  { %v772_v39 = vpop.xlane.xlu1 %771  ;;  %1347 = vpow2.f32 %v992_v38  ;;  %v513_v35 = vadd.f32 1.0, %v1336_v60 }
 0x5bf   :  { %v995_v49 = vmul.f32 -1.442695, %v772_v39  ;;  %1349 = vpow2.f32 %v987_v40  ;;  %v1338_v32 = vpop.eup %1337 }
 0x5c0   :  { %1351 = vpow2.f32 %v986_v45  ;;  %v1835_v62 = vpop.eup %1339  ;;  %v649_v6 = vadd.f32 1.0, %v1338_v32 }
 0x5c1   :  { %1353 = vpow2.f32 %v995_v49 }
 0x5c2   :  { %1355 = vpow2.f32 %v994_v54 }
 0x5c3   :  { %1357 = vrcp.f32 %v368_v20 }
 0x5c4   :  { %1359 = vrcp.f32 %v512_v23  ;;  %v1837_v1 = vpop.eup %1341 }
 0x5c5   :  { %1361 = vrcp.f32 %v511_v59  ;;  %v1344_v5 = vpop.eup %1343 }
 0x5c6   :  { %1363 = vrcp.f32 %v514_v61  ;;  %v648_v12 = vadd.f32 1.0, %v1344_v5 }
 0x5c7   :  { %v1346_v17 = vpop.eup %1345 }
 0x5c8   :  { %v1348_v8 = vpop.eup %1347  ;;  %v786_v16 = vadd.f32 1.0, %v1346_v17 }
 0x5c9   :  { %v1350_v11 = vpop.eup %1349  ;;  %v785_v26 = vadd.f32 1.0, %v1348_v8 }
 0x5ca   :  { %v1352_v15 = vpop.eup %1351  ;;  %v651_v28 = vadd.f32 1.0, %v1350_v11 }
 0x5cb   :  { %v1354_v25 = vpop.eup %1353  ;;  %v650_v34 = vadd.f32 1.0, %v1352_v15 }
 0x5cc   :  { %v1356_v27 = vpop.eup %1355  ;;  %v788_v38 = vadd.f32 1.0, %v1354_v25 }
 0x5cd   :  { %v1358_v29 = vpop.eup %1357  ;;  %v787_v40 = vadd.f32 1.0, %v1356_v27 }
 0x5ce   :  { %v1360_v37 = vpop.eup %1359 }
 0x5cf   :  { %v1362_v39 = vpop.eup %1361  ;;  %v524_v60 = vmul.f32 %v1360_v37, %v1710_v42 }
 0x5d0   :  { %v1364_v41 = vpop.eup %1363 }
 0x5d1   :  { %v526_v42 = vmul.f32 %v1364_v41, %v1724_v50 }
 0x637   :  { %v905_v63 = vpop.xlane.xlu1 %904 }
 0x638   :  { %v1001_v3 = vmul.f32 -1.442695, %v905_v63  ;;  %v903_v4 = vpop.xlane.xlu0 %902  ;;  %v523_v63 = vmul.f32 %v1362_v39, %v1713_v44 }
 0x639   :  { %v1000_v52 = vmul.f32 -1.442695, %v903_v4 }
 0x63a   :  { %1365 = vpow2.f32 %v1001_v3  ;;  %v379_v3 = vmul.f32 %v1833_v58, %v1669_v18  ;;  %v381_v58 = vmul.f32 %v1837_v1, %v1685_v30 }
 0x63b   :  { %1367 = vpow2.f32 %v1000_v52  ;;  %v909_v10 = vpop.xlane.xlu1 %908 }
 0x63c   :  { %1369 = vrcp.f32 %v513_v35  ;;  %v1003_v13 = vmul.f32 -1.442695, %v909_v10  ;;  %v907_v14 = vpop.xlane.xlu0 %906  ;;  %v528_v8 = vadd.f32 %v524_v60, %v379_v3  ;;  %v530_v15 = vadd.f32 %v526_v42, %v381_v58 }
 0x63d   :  { %1371 = vrcp.f32 %v649_v6  ;;  %v1002_v22 = vmul.f32 -1.442695, %v907_v14  ;;  %v378_v6 = vmul.f32 %v1835_v62, %v1673_v21 }
 0x63e   :  { %1373 = vpow2.f32 %v1003_v13  ;;  %v380_v13 = vmul.f32 %v1358_v29, %v1689_v33 }
 0x63f   :  { %1375 = vpow2.f32 %v1002_v22 }
 0x640   :  { %1377 = vrcp.f32 %v648_v12  ;;  %v527_v12 = vadd.f32 %v523_v63, %v378_v6 }
 0x641   :  { %1379 = vrcp.f32 %v786_v16 }
 0x642   :  { %1381 = vrcp.f32 %v785_v26 }
 0x643   :  { %1383 = vrcp.f32 %v651_v28 }
 0x644   :  { %v1366_v43 = vpop.eup %1365  ;;  %1385 = vrcp.f32 %v650_v34 }
 0x645   :  { %v1368_v45 = vpop.eup %1367  ;;  %1387 = vrcp.f32 %v788_v38  ;;  %v923_v47 = vadd.f32 1.0, %v1366_v43 }
 0x646   :  { %v1370_v49 = vpop.eup %1369  ;;  %1389 = vrcp.f32 %v787_v40  ;;  %v922_v51 = vadd.f32 1.0, %v1368_v45 }
 0x647   :  { %v1372_v54 = vpop.eup %1371  ;;  %1391 = vrcp.f32 %v923_v47  ;;  %v525_v11 = vmul.f32 %v1370_v49, %v1727_v55 }
 0x648   :  { %v1374_v57 = vpop.eup %1373  ;;  %1393 = vrcp.f32 %v922_v51  ;;  %v661_v4 = vmul.f32 %v1372_v54, %v1746_v0 }
 0x649   :  { %v1376_v20 = vpop.eup %1375  ;;  %v925_v23 = vadd.f32 1.0, %v1374_v57  ;;  %v529_v22 = vadd.f32 %v525_v11, %v380_v13 }
 0x64a   :  { %v1378_v59 = vpop.eup %1377  ;;  %v924_v61 = vadd.f32 1.0, %v1376_v20  ;;  %v665_v62 = vadd.f32 %v661_v4, %v528_v8 }
 0x64b   :  { %v1380_v32 = vpop.eup %1379  ;;  %1395 = vrcp.f32 %v925_v23  ;;  %v660_v52 = vmul.f32 %v1378_v59, %v1749_v2 }
 0x64c   :  { %v1382_v35 = vpop.eup %1381  ;;  %1397 = vrcp.f32 %v924_v61  ;;  %v798_v44 = vmul.f32 %v1380_v32, %v1780_v19 }
 0x64d   :  { %v1384_v5 = vpop.eup %1383  ;;  %v797_v18 = vmul.f32 %v1382_v35, %v1783_v24  ;;  %v664_v14 = vadd.f32 %v660_v52, %v527_v12 }
 0x64e   :  { %v1386_v17 = vpop.eup %1385  ;;  %v663_v21 = vmul.f32 %v1384_v5, %v1760_v7  ;;  %v802_v16 = vadd.f32 %v798_v44, %v665_v62 }
 0x64f   :  { %v1388_v10 = vpop.eup %1387  ;;  %v662_v50 = vmul.f32 %v1386_v17, %v1763_v9  ;;  %v801_v30 = vadd.f32 %v797_v18, %v664_v14 }
 0x650   :  { %v1390_v0 = vpop.eup %1389  ;;  %v800_v55 = vmul.f32 %v1388_v10, %v1794_v31  ;;  %v667_v1 = vadd.f32 %v663_v21, %v530_v15 }
 0x651   :  { %v1392_v2 = vpop.eup %1391  ;;  %v799_v25 = vmul.f32 %v1390_v0, %v1797_v36  ;;  %v666_v33 = vadd.f32 %v662_v50, %v529_v22 }
 0x652   :  { %v1394_v19 = vpop.eup %1393  ;;  %v935_v24 = vmul.f32 %v1392_v2, %v1814_v46  ;;  %v804_v29 = vadd.f32 %v800_v55, %v667_v1 }
 0x653   :  { %v934_v7 = vmul.f32 %v1394_v19, %v1817_v48  ;;  %v803_v31 = vadd.f32 %v799_v25, %v666_v33 }
 0x654   :  { %v939_v26 = vadd.f32 %v935_v24, %v802_v16 }
 0x655   :  { %v1396_v27 = vpop.eup %1395  ;;  %v938_v28 = vadd.f32 %v934_v7, %v801_v30 }
 0x656   :  { %v1398_v9 = vpop.eup %1397  ;;  %v937_v34 = vmul.f32 %v1396_v27, %v1824_v53  ;;  %943 = vst [vmem:[#allocation10 + $0x8] sm:$0xff] %v939_v26 }
 0x657   :  { %v936_v46 = vmul.f32 %v1398_v9, %v1827_v56  ;;  %942 = vst [vmem:[#allocation10] sm:$0xff] %v938_v28 }
 0x658   :  { %v941_v36 = vadd.f32 %v937_v34, %v804_v29 }
 0x659   :  { %v940_v37 = vadd.f32 %v936_v46, %v803_v31 }
 0x65a   :  { %945 = vst [vmem:[#allocation10 + $0x18] sm:$0xff] %v941_v36 }
 0x65b   :  { %944 = vst [vmem:[#allocation10 + $0x10] sm:$0xff] %v940_v37 }
 0x65c   :  { %1498 = shalt.err (!%p1495_p8)
}
 0x65d   :  { %s1499_s11 = scalar_lea.hbm %s1884_s7, 512 }
 0x65e   :  { %p1500_p9 = scmp.ne.s32.totalorder %s1884_s7, %s1499_s11  ;;  %p1503_p10 = scmp.lt.u32.totalorder %s1499_s11, %s1884_s7 }
 0x660   :  { %p1505_p11 = pnand %p1503_p10, %p1500_p9 }
 0x662   :  { %1508 = shalt.err (!%p1505_p11)
}
 0x663   :  { %957 = dma.vmem_to_hbm [thread:$0]  %s952_s6, 512, %s1884_s7, [#allocation4], %s1519_s13, %s1519_s13, %s1520_s14  }
 0x664   :  { %1515 = dma.done.wait [#allocation4], 512  }
 0x665   :  { %1516 = vsyncadd [#allocation4], 4294966784 }
 0x666   :  { %961 = vsyncpa [#allocation3], 1 }
 0x667   :  { %962 = vsyncpa [#allocation6], 1 }
 0x668   :  { %963 = vsyncpa [#allocation9], 1 }
 0x669   :  { %964 = vsyncpa [#allocation4], 1 }

</bundles_post_ra>
